<compile_context>
chip_gen: v7x
topology: tpu7x:2x2x1
jax: 0.10.0
libtpu: 0.0.40
codegen_flags: <defaults>
</compile_context>

<pallas_src>
import functools

import jax
import jax.numpy as jnp
from jax.experimental import pallas as pl
from jax.experimental.pallas import tpu as pltpu


def _round_up(x, m):
    return ((x + m - 1) // m) * m


def _tensor_square_kernel(x_ref, wc_ref, wc0_ref, s_ref, o_ref, *, nd):
    """Fused bilinear form.

    x_ref  : (TZ, n_in)    activations (no ones column; folded into wc0)
    wc_ref : (n_in, 2*nd)  [Wflat | R], rows for the real channels (nd = n*dim_out)
    wc0_ref: (1, 2*nd)     [Wflat | R], row of the constant 'ones' channel (or zeros)
    s_ref  : (nd, dim_out) tiled-identity group-sum matrix
    o_ref  : (TZ, dim_out)
    """
    x = x_ref[...].astype(jnp.float32)                                 # (TZ, n_in)
    # Single MXU matmul producing both y and b, lane-dense (N = 2*nd).
    yb = jnp.dot(x, wc_ref[...], preferred_element_type=jnp.float32) + wc0_ref[...]
    p = yb[:, :nd] * yb[:, nd:]                                        # (TZ, nd)
    # out[z,k] = sum_i x_aug[z,i] * y[z, i*dim_out + k]  == (y*b) @ S  (second matmul,
    # avoids per-i lane slices / broadcasts / VALU reduce chains).
    out = jnp.dot(p, s_ref[...], preferred_element_type=jnp.float32)   # (TZ, dim_out)
    # TODO(synk): pack 128//dim_out z-rows per output row for fully lane-dense
    # stores; that needs a sublane->lane relayout ((tz,dim_out)->(tz//p, p*dim_out))
    # whose Mosaic reshape lowering is not guaranteed, so the output block stays
    # (tz, dim_out) (masked stores; DMA bytes to HBM are unaffected).
    o_ref[...] = out.astype(o_ref.dtype)


def learnable_tensor_square(features, kernel_kij, *, linear=True, tz=None):
    """features: [..., n_in]; kernel_kij: [dim_out, n, n] (n = n_in + 1 if linear)."""
    *size, n_in = features.shape
    x = features.reshape(-1, n_in)
    Z = x.shape[0]
    dim_out = kernel_kij.shape[0]
    n = n_in + 1 if linear else n_in
    assert kernel_kij.shape == (dim_out, n, n)
    nd = n * dim_out

    f32 = jnp.float32
    K = kernel_kij.astype(f32)
    # Wflat[j, i*dim_out + k] = K[k, i, j]
    wflat = jnp.transpose(K, (2, 1, 0)).reshape(n, nd)
    # R[i, i*dim_out + k] = 1   (spreads x_aug[:, i] across its dim_out-wide lane group)
    r = jnp.kron(jnp.eye(n, dtype=f32), jnp.ones((1, dim_out), f32))
    wcombo = jnp.concatenate([wflat, r], axis=1)                        # (n, 2*nd)
    if linear:
        wc, wc0 = wcombo[1:], wcombo[:1]    # ones channel folded into a bias row
    else:
        wc, wc0 = wcombo, jnp.zeros((1, 2 * nd), f32)
    # S[i*dim_out + k, k'] = (k == k')
    s = jnp.tile(jnp.eye(dim_out, dtype=f32), (n, 1))                   # (nd, dim_out)

    # Batch tile: large (amortizes ~0.35us per grid step) but not bigger than needed.
    if tz is None:
        tz = max(8, min(1024, _round_up(Z, 8)))
    tz = _round_up(int(tz), 8)
    grid = (pl.cdiv(Z, tz),)

    out = pl.pallas_call(
        functools.partial(_tensor_square_kernel, nd=nd),
        out_shape=jax.ShapeDtypeStruct((Z, dim_out), features.dtype),
        grid_spec=pltpu.PrefetchScalarGridSpec(
            num_scalar_prefetch=0,
            grid=grid,
            in_specs=[
                pl.BlockSpec((tz, n_in), lambda i: (i, 0)),
                pl.BlockSpec((wc.shape[0], 2 * nd), lambda i: (0, 0)),
                pl.BlockSpec((1, 2 * nd), lambda i: (0, 0)),
                pl.BlockSpec((nd, dim_out), lambda i: (0, 0)),
            ],
            out_specs=pl.BlockSpec((tz, dim_out), lambda i: (i, 0)),
        ),
        compiler_params=pltpu.CompilerParams(
            dimension_semantics=("parallel",)),
    )(x, wc, wc0, s)
    return out.reshape(*size, dim_out)


if __name__ == "__main__":
    key = jax.random.PRNGKey(0)
    k_feat, k_T, k_W = jax.random.split(key, 3)

    # small synthetic irreps setup consistent with the module's __init__
    n_in = 15                      # rs.dim(Rs_in)
    linear = True
    n = n_in + 1                   # ones channel prepended (linear=True)
    dim_out = 8                    # rs.dim(Rs_out)
    dim_ts = n * (n + 1) // 2      # size of the (symmetric) tensor-square basis

    # TODO(synk): the true sparse Clebsch-Gordan change-of-basis T produced by
    # e3nn's rs.tensor_square is not reproduced here; a deterministic dense
    # surrogate with the same shape role [dim_ts, n*n] is used instead.
    T = jax.random.normal(k_T, (dim_ts, n * n), jnp.float32) / n
    # KernelLinear weights: maps tensor-square irreps -> output irreps
    W = jax.random.normal(k_W, (dim_out, dim_ts), jnp.float32) / jnp.sqrt(dim_ts)
    # forward: kernel = (T.t() @ W.T).T.reshape(dim_out, n, n) == (W @ T).reshape(...)
    kernel_kij = (W @ T).reshape(dim_out, n, n)

    # features: [..., channels] with channels last, e.g. batch dims (2, 8)
    features = jax.random.normal(k_feat, (2, 8, n_in), jnp.float32)

    out = learnable_tensor_square(features, kernel_kij, linear=linear)
    out = jax.block_until_ready(out)

    # pure-JAX reference check of the exact forward semantics
    xr = features.reshape(-1, n_in)
    xr = jnp.concatenate([jnp.ones((xr.shape[0], 1), xr.dtype), xr], axis=1)
    ref = jnp.einsum('kij,zi,zj->zk', kernel_kij, xr, xr).reshape(2, 8, dim_out)

    assert out.shape == (2, 8, dim_out)
    assert out.dtype == features.dtype
    assert jnp.allclose(out, ref, atol=2e-4, rtol=2e-4)
    print("KERNEL_OK")
</pallas_src>

<mosaic_0001>
module attributes {stable_mosaic.version = 11 : i64} {
  func.func @_tensor_square_kernel(%arg0: i32, %arg1: memref<16x15xf32, #tpu.memory_space<vmem>>, %arg2: memref<15x256xf32, #tpu.memory_space<vmem>>, %arg3: memref<1x256xf32, #tpu.memory_space<vmem>>, %arg4: memref<128x8xf32, #tpu.memory_space<vmem>>, %arg5: memref<16x8xf32, #tpu.memory_space<vmem>>) attributes {dimension_semantics = [#tpu.dimension_semantics<parallel>], iteration_bounds = array<i64: 1>, scalar_prefetch = 0 : i64, scratch_operands = 0 : i64, tpu.core_type = #tpu.core_type<tc>, window_params = [{transform_indices = @transform_0, window_bounds = array<i64: 16, 15>}, {pipeline_mode = #tpu.pipeline_mode<synchronous>, transform_indices = @transform_1, window_bounds = array<i64: 15, 256>}, {pipeline_mode = #tpu.pipeline_mode<synchronous>, transform_indices = @transform_2, window_bounds = array<i64: 1, 256>}, {pipeline_mode = #tpu.pipeline_mode<synchronous>, transform_indices = @transform_3, window_bounds = array<i64: 128, 8>}, {transform_indices = @transform_4, window_bounds = array<i64: 16, 8>}]} {
    %c0 = arith.constant 0 : index
    %c0_0 = arith.constant 0 : index
    %0 = vector.load %arg1[%c0, %c0_0] : memref<16x15xf32, #tpu.memory_space<vmem>>, vector<16x15xf32>
    %c0_1 = arith.constant 0 : index
    %c0_2 = arith.constant 0 : index
    %1 = vector.load %arg2[%c0_1, %c0_2] : memref<15x256xf32, #tpu.memory_space<vmem>>, vector<15x256xf32>
    %cst = arith.constant dense<0.000000e+00> : vector<16x256xf32>
    %2 = tpu.matmul %0, %1, %cst {dimension_numbers = #tpu.dot_dimension_numbers<[1], [0], [0], [1], [0, 0, 1, 1], [], []>} : vector<16x15xf32>, vector<15x256xf32>, vector<16x256xf32> -> vector<16x256xf32>
    %c0_3 = arith.constant 0 : index
    %c0_4 = arith.constant 0 : index
    %3 = vector.load %arg3[%c0_3, %c0_4] : memref<1x256xf32, #tpu.memory_space<vmem>>, vector<1x256xf32>
    %4 = vector.broadcast %3 : vector<1x256xf32> to vector<16x256xf32>
    %5 = arith.addf %2, %4 : vector<16x256xf32>
    %6 = vector.extract_strided_slice %5 {offsets = [0, 0], sizes = [16, 128], strides = [1, 1]} : vector<16x256xf32> to vector<16x128xf32>
    %7 = vector.extract_strided_slice %5 {offsets = [0, 128], sizes = [16, 128], strides = [1, 1]} : vector<16x256xf32> to vector<16x128xf32>
    %8 = arith.mulf %6, %7 : vector<16x128xf32>
    %c0_5 = arith.constant 0 : index
    %c0_6 = arith.constant 0 : index
    %9 = vector.load %arg4[%c0_5, %c0_6] : memref<128x8xf32, #tpu.memory_space<vmem>>, vector<128x8xf32>
    %cst_7 = arith.constant dense<0.000000e+00> : vector<16x8xf32>
    %10 = tpu.matmul %8, %9, %cst_7 {dimension_numbers = #tpu.dot_dimension_numbers<[1], [0], [0], [1], [0, 0, 1, 1], [], []>} : vector<16x128xf32>, vector<128x8xf32>, vector<16x8xf32> -> vector<16x8xf32>
    %c0_8 = arith.constant 0 : index
    %c0_9 = arith.constant 0 : index
    %11 = vector.load %arg5[%c0_8, %c0_9] : memref<16x8xf32, #tpu.memory_space<vmem>>, vector<16x8xf32>
    tpu.vector_store %arg5[%c0_8, %c0_9], %10 {strides = array<i32>} : memref<16x8xf32, #tpu.memory_space<vmem>>, vector<16x8xf32>,
    return
  }
  func.func @transform_0(%arg0: i32) -> (i32, i32) {
    %c0_i32 = arith.constant 0 : i32
    %c0_i32_0 = arith.constant 0 : i32
    return %arg0, %c0_i32 : i32, i32
  }
  func.func @transform_1(%arg0: i32) -> (i32, i32) {
    %c0_i32 = arith.constant 0 : i32
    %c0_i32_0 = arith.constant 0 : i32
    %c0_i32_1 = arith.constant 0 : i32
    return %c0_i32, %c0_i32_0 : i32, i32
  }
  func.func @transform_2(%arg0: i32) -> (i32, i32) {
    %c0_i32 = arith.constant 0 : i32
    %c0_i32_0 = arith.constant 0 : i32
    %c0_i32_1 = arith.constant 0 : i32
    return %c0_i32, %c0_i32_0 : i32, i32
  }
  func.func @transform_3(%arg0: i32) -> (i32, i32) {
    %c0_i32 = arith.constant 0 : i32
    %c0_i32_0 = arith.constant 0 : i32
    %c0_i32_1 = arith.constant 0 : i32
    return %c0_i32, %c0_i32_0 : i32, i32
  }
  func.func @transform_4(%arg0: i32) -> (i32, i32) {
    %c0_i32 = arith.constant 0 : i32
    %c0_i32_0 = arith.constant 0 : i32
    return %arg0, %c0_i32 : i32, i32
  }
}

</mosaic_0001>

<bundles_post_ra>
// kernel: tpu_custom_call.1
= control target key start
LH: loop header
LB: loop body
LE: loop exit
PB: predicated region body
PF: predicated region fallthrough
CT: control target
= control target key end

     0   :  { %vm42_vm0 = vcmask 1046528   ;;  %vm323_vm1 = vmmov 1   ;;  %v324_v2 = vmov 0.0   ;;  %vm35_vm3 = vcmask 121856   ;;  %s425_s1 = inlined_call_operand.vmem [shape: f32[15,256], index: 1, kind: input, shape index: {}]   ;;  %s426_s3 = inlined_call_operand.vmem [shape: f32[128,8], index: 3, kind: input, shape index: {}]   ;;  %s427_s0 = inlined_call_operand.vmem [shape: f32[16,15], index: 0, kind: input, shape index: {}]   ;;  %s428_s2 = inlined_call_operand.vmem [shape: f32[1,256], index: 2, kind: input, shape index: {}]   ;;  %s429_s4 = inlined_call_operand.vmem [shape: f32[16,8], index: 4, kind: output, shape index: {}]  }
   0x1   :  { %v20_v0 = vld [vmem:[%s425_s1 + $0x8] sm:$0xff]  ;;  %v22_v1 = vld [vmem:[%s425_s1 + $0x18] sm:$0x7f]  ;;  %vm284_vm2 = vmpackc.low %vm42_vm0, %vm323_vm1  ;;  %113 = vmatprep.mubr.f32.mxu0 %v324_v2  ;;  %v25_v33 = vlaneseq  ;;  %vm219_vm4 = vcmask 64512  }
   0x2   :  { %v283_v3 = vpack.c.bf16 %v22_v1, %v20_v0  ;;  %v19_v4 = vld [vmem:[%s425_s1] sm:$0xff]  ;;  %v21_v5 = vld [vmem:[%s425_s1 + $0x10] sm:$0x7f]  ;;  %v129_v8 = vld [vmem:[%s426_s3 + $0x8] sm:$0xff] }
   0x3   :  { %v286_v6 = vpack.c.bf16 %v21_v5, %v19_v4  ;;  %v128_v7 = vld [vmem:[%s426_s3] sm:$0xff]  ;;  %v130_v10 = vld [vmem:[%s426_s3 + $0x10] sm:$0xff]  ;;  %v131_v11 = vld [vmem:[%s426_s3 + $0x18] sm:$0xff]  ;;  %v26_v34 = vshrl.u32 %v25_v33, 7 }
   0x4   :  { %285 = vmatprep.subr.msk.bf16.mxu0 %vm284_vm2, %v283_v3  ;;  %v289_v9 = vpack.c.bf16 %v129_v8, %v128_v7  ;;  %v17_v12 = vld [vmem:[%s427_s0] sm:$0xff]  ;;  %v293_v13 = vpack.c.bf16 %v131_v11, %v130_v10  ;;  %v133_v15 = vld [vmem:[%s426_s3 + $0x28] sm:$0xff]  ;;  %v134_v18 = vld [vmem:[%s426_s3 + $0x30] sm:$0xff] }
   0x5   :  { %288 = vmatpush1.bf16.msk.msra.mxu0 %vm284_vm2, %v286_v6  ;;  %v132_v14 = vld [vmem:[%s426_s3 + $0x20] sm:$0xff]  ;;  %v18_v17 = vld [vmem:[%s427_s0 + $0x8] sm:$0xff]  ;;  %v135_v19 = vld [vmem:[%s426_s3 + $0x38] sm:$0xff]  ;;  %v27_v35 = vsub.s32 0, %v26_v34  ;;  %v31_v37 = vsub.s32 1, %v26_v34 }
   0x6   :  { %290 = vmatprep.subr.bf16.mxu1 %v289_v9  ;;  %v297_v16 = vpack.c.bf16 %v133_v15, %v132_v14  ;;  %v301_v20 = vpack.c.bf16 %v135_v19, %v134_v18  ;;  %v136_v21 = vld [vmem:[%s426_s3 + $0x40] sm:$0xff]  ;;  %v137_v22 = vld [vmem:[%s426_s3 + $0x48] sm:$0xff]  ;;  %v138_v24 = vld [vmem:[%s426_s3 + $0x50] sm:$0xff] }
   0x7   :  { %292 = vmatpush3.bf16.msra.mxu1 %v289_v9  ;;  %v305_v23 = vpack.c.bf16 %v137_v22, %v136_v21  ;;  %v139_v25 = vld [vmem:[%s426_s3 + $0x58] sm:$0xff]  ;;  %v140_v27 = vld [vmem:[%s426_s3 + $0x60] sm:$0xff]  ;;  %v141_v28 = vld [vmem:[%s426_s3 + $0x68] sm:$0xff] }
   0x8   :  { %228 = vmatmul.mubr.msk.f32.vlgmr.msra.gmra.mrb[0].mxu0 %vm35_vm3, %v17_v12  ;;  %294 = vmatprep.subr.bf16.mxu1 %v293_v13  ;;  %v309_v26 = vpack.c.bf16 %v139_v25, %v138_v24  ;;  %v313_v29 = vpack.c.bf16 %v141_v28, %v140_v27  ;;  %v142_v30 = vld [vmem:[%s426_s3 + $0x70] sm:$0xff]  ;;  %v143_v31 = vld [vmem:[%s426_s3 + $0x78] sm:$0xff]  ;;  %v23_v36 = vld [vmem:[%s428_s2] sm:$0x3] }
   0x9   :  { %119 = vmatprep.mubr.f32.mxu0 %v324_v2  ;;  %v317_v32 = vpack.c.bf16 %v143_v31, %v142_v30  ;;  %v28_v38 = vrot.slane %v23_v36, %v27_v35  ;;  %v32_v39 = vrot.slane %v23_v36, %v31_v37 }
   0xb   :  { %296 = vmatpush3.bf16.msra.mxu1 %v293_v13 }
   0xc   :  { %229 = vmatmul.mubr.msk.f32.gmra.mrb[2].mxu0 %vm35_vm3, %v18_v17  ;;  %298 = vmatprep.subr.bf16.mxu1 %v297_v16 }
   0xf   :  { %300 = vmatpush3.bf16.msra.mxu1 %v297_v16 }
  0x10   :  { %302 = vmatprep.subr.bf16.mxu1 %v301_v20 }
  0x13   :  { %304 = vmatpush3.bf16.msra.mxu1 %v301_v20 }
  0x14   :  { %306 = vmatprep.subr.bf16.mxu1 %v305_v23 }
  0x17   :  { %308 = vmatpush3.bf16.msra.mxu1 %v305_v23 }
  0x18   :  { %310 = vmatprep.subr.bf16.mxu1 %v309_v26 }
  0x1b   :  { %312 = vmatpush3.bf16.msra.mxu1 %v309_v26 }
  0x1c   :  { %314 = vmatprep.subr.bf16.mxu1 %v313_v29 }
  0x1f   :  { %316 = vmatpush3.bf16.msra.mxu1 %v313_v29 }
  0x20   :  { %318 = vmatprep.subr.bf16.mxu1 %v317_v32 }
  0x23   :  { %320 = vmatpush3.bf16.msra.mxu1 %v317_v32 }
  0xdb   :  { %v115_v40 = vpop.f32.mrb[0].mxu0 }
  0xdc   :  { %v116_v41 = vadd.f32 %v115_v40, %v28_v38  ;;  %v117_v42 = vpop.f32.mrb[1].mxu0 }
  0xdd   :  { %v118_v43 = vadd.f32 %v117_v42, %v32_v39 }
  0xdf   :  { %v121_v44 = vpop.f32.mrb[2].mxu0  ;;  %v126_v45 = vmul.f32 %v118_v43, %v116_v41 }
  0xe0   :  { %v122_v46 = vadd.f32 %v121_v44, %v28_v38  ;;  %v123_v47 = vpop.f32.mrb[3].mxu0 }
  0xe1   :  { %v124_v48 = vadd.f32 %v123_v47, %v32_v39  ;;  %280 = vmatprep.mubr.f32.mxu1 %v126_v45 }
  0xe3   :  { %v127_v49 = vmul.f32 %v124_v48, %v122_v46 }
  0xe5   :  { %281 = vmatmul.mubr.f32.vlgmr.msra.gmra.mrb[0].mxu1 %v127_v49 }
 0x1b8   :  { %v282_v50 = vpop.f32.mrb[0].mxu1 }
 0x1b9   :  { %221 = vst.msk [vmem:[%s429_s4 + $0x8] sm:$0xff] %vm219_vm4, %v282_v50  ;;  %v210_v51 = vpop.f32.mrb[1].mxu1 }
 0x1ba   :  { %220 = vst.msk [vmem:[%s429_s4] sm:$0xff] %vm219_vm4, %v210_v51 }

</bundles_post_ra>
